<compile_context>
chip_gen: v7x
topology: tpu7x:2x2x1
jax: 0.10.0
libtpu: 0.0.40
codegen_flags: <defaults>
</compile_context>

<pallas_src>
import jax
import jax.numpy as jnp
from jax.experimental import pallas as pl
from jax.experimental.pallas import tpu as pltpu

WEEK_VOCAB, WEEK_DIM = 7, 3
TIME_VOCAB, TIME_DIM = 1440, 8
OUT_DIM = WEEK_DIM + TIME_DIM + 1   # == Net.out_size() == 12
OUT_PAD = 128                       # lane-dense output width (sliced in wrapper)

RADIX = 128                         # timeID = hi * 128 + lo
RADIX_BITS = 7
NUM_HI = (TIME_VOCAB + RADIX - 1) // RADIX   # 12 (table zero-padded 1440 -> 1536)


def _round_up(x, m):
    return ((x + m - 1) // m) * m


def attr_kernel(ids_ref, dist_ref, week_tbl_ref, time_tbl_ref, out_ref):
    tb = ids_ref.shape[0]

    week_ids = ids_ref[:, 0:1]          # (TB, 1) int32
    time_ids = ids_ref[:, 1:2]          # (TB, 1) int32

    # --- weekID embedding: tiny one-hot matmul (vocab 7; fine on the MXU).
    week_oh = (jax.lax.broadcasted_iota(jnp.int32, (tb, WEEK_VOCAB), 1)
               == week_ids).astype(jnp.float32)                        # (TB, 7)
    week_em = jnp.dot(week_oh, week_tbl_ref[...],
                      preferred_element_type=jnp.float32)              # (TB, 3)

    # --- timeID embedding: radix-128 decomposed gather.
    # timeID = hi*128 + lo; packed table W2[lo, hi*8 + d] = tbl[timeID, d].
    hi = time_ids >> RADIX_BITS                                        # (TB, 1)
    lo = time_ids & (RADIX - 1)                                        # (TB, 1)
    lo_oh = (jax.lax.broadcasted_iota(jnp.int32, (tb, RADIX), 1)
             == lo).astype(jnp.float32)                                # (TB, 128)
    tmp = jnp.dot(lo_oh, time_tbl_ref[...],
                  preferred_element_type=jnp.float32)                  # (TB, 96)
    time_em = jnp.zeros((tb, TIME_DIM), jnp.float32)
    for h in range(NUM_HI):   # unrolled 12-way static-lane-slice select (VPU)
        time_em = time_em + jnp.where(
            hi == h, tmp[:, h * TIME_DIM:(h + 1) * TIME_DIM], 0.0)

    # --- torch.cat(..., dim=1): one concatenated, lane-dense, unmasked store.
    pad = jnp.zeros((tb, OUT_PAD - OUT_DIM), jnp.float32)
    out_ref[...] = jnp.concatenate(
        [week_em, time_em, dist_ref[...], pad], axis=1)


def _pack_time_table(time_tbl):
    """(1440, 8) embedding table -> lane-dense (128, 96) matmul weight."""
    padded = jnp.zeros((NUM_HI * RADIX, TIME_DIM), jnp.float32)
    padded = padded.at[:TIME_VOCAB].set(time_tbl.astype(jnp.float32))
    return (padded.reshape(NUM_HI, RADIX, TIME_DIM)
                  .transpose(1, 0, 2)
                  .reshape(RADIX, NUM_HI * TIME_DIM))


def attr_forward(week_ids, time_ids, dist, week_tbl, time_tbl):
    """week_ids, time_ids: (B,) int; dist: (B,) float; returns (B, 12) f32.

    Contract (matches nn.Embedding on valid inputs): 0 <= weekID < 7 and
    0 <= timeID < 1440. Out-of-range ids yield all-zero embedding rows
    (PyTorch would raise).
    """
    B = week_ids.shape[0]
    # Batch tile: <= 512 rows keeps every per-tile buffer well under the v7x
    # scoped-VMEM default; multiple of 8 satisfies the sublane constraint.
    TB = min(512, _round_up(B, 8))
    Bp = _round_up(B, TB)

    ids = jnp.stack([week_ids.astype(jnp.int32),
                     time_ids.astype(jnp.int32)], axis=1)      # (B, 2)
    dist2 = dist.astype(jnp.float32).reshape(B, 1)             # (B, 1)
    if Bp != B:
        ids = jnp.pad(ids, ((0, Bp - B), (0, 0)))
        dist2 = jnp.pad(dist2, ((0, Bp - B), (0, 0)))

    week_w = week_tbl.astype(jnp.float32)
    time_w = _pack_time_table(time_tbl)

    out = pl.pallas_call(
        attr_kernel,
        out_shape=jax.ShapeDtypeStruct((Bp, OUT_PAD), jnp.float32),
        grid=(Bp // TB,),
        in_specs=[
            pl.BlockSpec((TB, 2), lambda g: (g, 0)),                     # ids (blocked)
            pl.BlockSpec((TB, 1), lambda g: (g, 0)),                     # dist (blocked)
            pl.BlockSpec((WEEK_VOCAB, WEEK_DIM), lambda g: (0, 0)),      # week table (resident)
            pl.BlockSpec((RADIX, NUM_HI * TIME_DIM), lambda g: (0, 0)),  # packed time table (resident)
        ],
        out_specs=pl.BlockSpec((TB, OUT_PAD), lambda g: (g, 0)),
        compiler_params=pltpu.CompilerParams(
            dimension_semantics=("parallel",)),
    )(ids, dist2, week_w, time_w)

    # Strip batch padding and the lane padding.
    return out[:B, :OUT_DIM]


if __name__ == "__main__":
    key = jax.random.PRNGKey(0)
    k_w, k_t, k_wid, k_tid, k_d = jax.random.split(key, 5)

    B = 8  # small batch

    # Deterministic parameter init (nn.Embedding default ~ N(0, 1)).
    week_tbl = jax.random.normal(k_w, (WEEK_VOCAB, WEEK_DIM), dtype=jnp.float32)
    time_tbl = jax.random.normal(k_t, (TIME_VOCAB, TIME_DIM), dtype=jnp.float32)

    # Inputs: attr dict fields.
    week_ids = jax.random.randint(k_wid, (B,), 0, WEEK_VOCAB, dtype=jnp.int32)
    time_ids = jax.random.randint(k_tid, (B,), 0, TIME_VOCAB, dtype=jnp.int32)
    dist = jax.random.uniform(k_d, (B,), dtype=jnp.float32) * 10.0

    out = attr_forward(week_ids, time_ids, dist, week_tbl, time_tbl)
    out = jax.block_until_ready(out)

    # Pure-JAX reference of the PyTorch forward.
    ref = jnp.concatenate(
        [week_tbl[week_ids], time_tbl[time_ids], dist.reshape(B, 1)], axis=1)

    assert out.shape == (B, OUT_DIM)
    assert jnp.allclose(out, ref, atol=1e-6), "mismatch vs reference"
    print("KERNEL_OK")
</pallas_src>

<mosaic_0001>
module attributes {stable_mosaic.version = 11 : i64} {
  func.func @attr_kernel(%arg0: i32, %arg1: memref<8x2xi32, #tpu.memory_space<vmem>>, %arg2: memref<8x1xf32, #tpu.memory_space<vmem>>, %arg3: memref<7x3xf32, #tpu.memory_space<vmem>>, %arg4: memref<128x96xf32, #tpu.memory_space<vmem>>, %arg5: memref<8x128xf32, #tpu.memory_space<vmem>>) attributes {dimension_semantics = [#tpu.dimension_semantics<parallel>], iteration_bounds = array<i64: 1>, scalar_prefetch = 0 : i64, scratch_operands = 0 : i64, tpu.core_type = #tpu.core_type<tc>, window_params = [{transform_indices = @transform_0, window_bounds = array<i64: 8, 2>}, {transform_indices = @transform_1, window_bounds = array<i64: 8, 1>}, {pipeline_mode = #tpu.pipeline_mode<synchronous>, transform_indices = @transform_2, window_bounds = array<i64: 7, 3>}, {pipeline_mode = #tpu.pipeline_mode<synchronous>, transform_indices = @transform_3, window_bounds = array<i64: 128, 96>}, {transform_indices = @transform_4, window_bounds = array<i64: 8, 128>}]} {
    %c0 = arith.constant 0 : index
    %c0_0 = arith.constant 0 : index
    %0 = vector.load %arg1[%c0, %c0_0] : memref<8x2xi32, #tpu.memory_space<vmem>>, vector<8x1xi32>
    %c0_1 = arith.constant 0 : index
    %c1 = arith.constant 1 : index
    %1 = vector.load %arg1[%c0_1, %c1] : memref<8x2xi32, #tpu.memory_space<vmem>>, vector<8x1xi32>
    %2 = tpu.iota {dimensions = array<i32: 1>} : vector<8x7xi32>
    %3 = vector.broadcast %0 : vector<8x1xi32> to vector<8x7xi32>
    %4 = arith.cmpi eq, %2, %3 : vector<8x7xi32>
    %5 = arith.extui %4 : vector<8x7xi1> to vector<8x7xi32>
    %6 = arith.sitofp %5 : vector<8x7xi32> to vector<8x7xf32>
    %c0_2 = arith.constant 0 : index
    %c0_3 = arith.constant 0 : index
    %7 = vector.load %arg3[%c0_2, %c0_3] : memref<7x3xf32, #tpu.memory_space<vmem>>, vector<7x3xf32>
    %cst = arith.constant dense<0.000000e+00> : vector<8x3xf32>
    %8 = tpu.matmul %6, %7, %cst {dimension_numbers = #tpu.dot_dimension_numbers<[1], [0], [0], [1], [0, 0, 1, 1], [], []>} : vector<8x7xf32>, vector<7x3xf32>, vector<8x3xf32> -> vector<8x3xf32>
    %c7_i32 = arith.constant 7 : i32
    %9 = vector.broadcast %c7_i32 : i32 to vector<8x1xi32>
    %10 = arith.shrsi %1, %9 : vector<8x1xi32>
    %c127_i32 = arith.constant 127 : i32
    %11 = vector.broadcast %c127_i32 : i32 to vector<8x1xi32>
    %12 = arith.andi %1, %11 : vector<8x1xi32>
    %13 = tpu.iota {dimensions = array<i32: 1>} : vector<8x128xi32>
    %14 = vector.broadcast %12 : vector<8x1xi32> to vector<8x128xi32>
    %15 = arith.cmpi eq, %13, %14 : vector<8x128xi32>
    %16 = arith.extui %15 : vector<8x128xi1> to vector<8x128xi32>
    %17 = arith.sitofp %16 : vector<8x128xi32> to vector<8x128xf32>
    %c0_4 = arith.constant 0 : index
    %c0_5 = arith.constant 0 : index
    %18 = vector.load %arg4[%c0_4, %c0_5] : memref<128x96xf32, #tpu.memory_space<vmem>>, vector<128x96xf32>
    %cst_6 = arith.constant dense<0.000000e+00> : vector<8x96xf32>
    %19 = tpu.matmul %17, %18, %cst_6 {dimension_numbers = #tpu.dot_dimension_numbers<[1], [0], [0], [1], [0, 0, 1, 1], [], []>} : vector<8x128xf32>, vector<128x96xf32>, vector<8x96xf32> -> vector<8x96xf32>
    %cst_7 = arith.constant 0.000000e+00 : f32
    %20 = vector.broadcast %cst_7 : f32 to vector<8x8xf32>
    %c0_i32 = arith.constant 0 : i32
    %21 = vector.broadcast %c0_i32 : i32 to vector<8x1xi32>
    %22 = arith.cmpi eq, %10, %21 : vector<8x1xi32>
    %23 = vector.extract_strided_slice %19 {offsets = [0, 0], sizes = [8, 8], strides = [1, 1]} : vector<8x96xf32> to vector<8x8xf32>
    %cst_8 = arith.constant 0.000000e+00 : f32
    %24 = vector.shape_cast %22 : vector<8x1xi1> to vector<8x1xi1>
    %25 = vector.broadcast %24 : vector<8x1xi1> to vector<8x8xi1>
    %26 = vector.broadcast %cst_8 : f32 to vector<8x8xf32>
    %27 = arith.select %25, %23, %26 : vector<8x8xi1>, vector<8x8xf32>
    %28 = arith.addf %20, %27 : vector<8x8xf32>
    %c1_i32 = arith.constant 1 : i32
    %29 = vector.broadcast %c1_i32 : i32 to vector<8x1xi32>
    %30 = arith.cmpi eq, %10, %29 : vector<8x1xi32>
    %31 = vector.extract_strided_slice %19 {offsets = [0, 8], sizes = [8, 8], strides = [1, 1]} : vector<8x96xf32> to vector<8x8xf32>
    %cst_9 = arith.constant 0.000000e+00 : f32
    %32 = vector.shape_cast %30 : vector<8x1xi1> to vector<8x1xi1>
    %33 = vector.broadcast %32 : vector<8x1xi1> to vector<8x8xi1>
    %34 = vector.broadcast %cst_9 : f32 to vector<8x8xf32>
    %35 = arith.select %33, %31, %34 : vector<8x8xi1>, vector<8x8xf32>
    %36 = arith.addf %28, %35 : vector<8x8xf32>
    %c2_i32 = arith.constant 2 : i32
    %37 = vector.broadcast %c2_i32 : i32 to vector<8x1xi32>
    %38 = arith.cmpi eq, %10, %37 : vector<8x1xi32>
    %39 = vector.extract_strided_slice %19 {offsets = [0, 16], sizes = [8, 8], strides = [1, 1]} : vector<8x96xf32> to vector<8x8xf32>
    %cst_10 = arith.constant 0.000000e+00 : f32
    %40 = vector.shape_cast %38 : vector<8x1xi1> to vector<8x1xi1>
    %41 = vector.broadcast %40 : vector<8x1xi1> to vector<8x8xi1>
    %42 = vector.broadcast %cst_10 : f32 to vector<8x8xf32>
    %43 = arith.select %41, %39, %42 : vector<8x8xi1>, vector<8x8xf32>
    %44 = arith.addf %36, %43 : vector<8x8xf32>
    %c3_i32 = arith.constant 3 : i32
    %45 = vector.broadcast %c3_i32 : i32 to vector<8x1xi32>
    %46 = arith.cmpi eq, %10, %45 : vector<8x1xi32>
    %47 = vector.extract_strided_slice %19 {offsets = [0, 24], sizes = [8, 8], strides = [1, 1]} : vector<8x96xf32> to vector<8x8xf32>
    %cst_11 = arith.constant 0.000000e+00 : f32
    %48 = vector.shape_cast %46 : vector<8x1xi1> to vector<8x1xi1>
    %49 = vector.broadcast %48 : vector<8x1xi1> to vector<8x8xi1>
    %50 = vector.broadcast %cst_11 : f32 to vector<8x8xf32>
    %51 = arith.select %49, %47, %50 : vector<8x8xi1>, vector<8x8xf32>
    %52 = arith.addf %44, %51 : vector<8x8xf32>
    %c4_i32 = arith.constant 4 : i32
    %53 = vector.broadcast %c4_i32 : i32 to vector<8x1xi32>
    %54 = arith.cmpi eq, %10, %53 : vector<8x1xi32>
    %55 = vector.extract_strided_slice %19 {offsets = [0, 32], sizes = [8, 8], strides = [1, 1]} : vector<8x96xf32> to vector<8x8xf32>
    %cst_12 = arith.constant 0.000000e+00 : f32
    %56 = vector.shape_cast %54 : vector<8x1xi1> to vector<8x1xi1>
    %57 = vector.broadcast %56 : vector<8x1xi1> to vector<8x8xi1>
    %58 = vector.broadcast %cst_12 : f32 to vector<8x8xf32>
    %59 = arith.select %57, %55, %58 : vector<8x8xi1>, vector<8x8xf32>
    %60 = arith.addf %52, %59 : vector<8x8xf32>
    %c5_i32 = arith.constant 5 : i32
    %61 = vector.broadcast %c5_i32 : i32 to vector<8x1xi32>
    %62 = arith.cmpi eq, %10, %61 : vector<8x1xi32>
    %63 = vector.extract_strided_slice %19 {offsets = [0, 40], sizes = [8, 8], strides = [1, 1]} : vector<8x96xf32> to vector<8x8xf32>
    %cst_13 = arith.constant 0.000000e+00 : f32
    %64 = vector.shape_cast %62 : vector<8x1xi1> to vector<8x1xi1>
    %65 = vector.broadcast %64 : vector<8x1xi1> to vector<8x8xi1>
    %66 = vector.broadcast %cst_13 : f32 to vector<8x8xf32>
    %67 = arith.select %65, %63, %66 : vector<8x8xi1>, vector<8x8xf32>
    %68 = arith.addf %60, %67 : vector<8x8xf32>
    %c6_i32 = arith.constant 6 : i32
    %69 = vector.broadcast %c6_i32 : i32 to vector<8x1xi32>
    %70 = arith.cmpi eq, %10, %69 : vector<8x1xi32>
    %71 = vector.extract_strided_slice %19 {offsets = [0, 48], sizes = [8, 8], strides = [1, 1]} : vector<8x96xf32> to vector<8x8xf32>
    %cst_14 = arith.constant 0.000000e+00 : f32
    %72 = vector.shape_cast %70 : vector<8x1xi1> to vector<8x1xi1>
    %73 = vector.broadcast %72 : vector<8x1xi1> to vector<8x8xi1>
    %74 = vector.broadcast %cst_14 : f32 to vector<8x8xf32>
    %75 = arith.select %73, %71, %74 : vector<8x8xi1>, vector<8x8xf32>
    %76 = arith.addf %68, %75 : vector<8x8xf32>
    %c7_i32_15 = arith.constant 7 : i32
    %77 = vector.broadcast %c7_i32_15 : i32 to vector<8x1xi32>
    %78 = arith.cmpi eq, %10, %77 : vector<8x1xi32>
    %79 = vector.extract_strided_slice %19 {offsets = [0, 56], sizes = [8, 8], strides = [1, 1]} : vector<8x96xf32> to vector<8x8xf32>
    %cst_16 = arith.constant 0.000000e+00 : f32
    %80 = vector.shape_cast %78 : vector<8x1xi1> to vector<8x1xi1>
    %81 = vector.broadcast %80 : vector<8x1xi1> to vector<8x8xi1>
    %82 = vector.broadcast %cst_16 : f32 to vector<8x8xf32>
    %83 = arith.select %81, %79, %82 : vector<8x8xi1>, vector<8x8xf32>
    %84 = arith.addf %76, %83 : vector<8x8xf32>
    %c8_i32 = arith.constant 8 : i32
    %85 = vector.broadcast %c8_i32 : i32 to vector<8x1xi32>
    %86 = arith.cmpi eq, %10, %85 : vector<8x1xi32>
    %87 = vector.extract_strided_slice %19 {offsets = [0, 64], sizes = [8, 8], strides = [1, 1]} : vector<8x96xf32> to vector<8x8xf32>
    %cst_17 = arith.constant 0.000000e+00 : f32
    %88 = vector.shape_cast %86 : vector<8x1xi1> to vector<8x1xi1>
    %89 = vector.broadcast %88 : vector<8x1xi1> to vector<8x8xi1>
    %90 = vector.broadcast %cst_17 : f32 to vector<8x8xf32>
    %91 = arith.select %89, %87, %90 : vector<8x8xi1>, vector<8x8xf32>
    %92 = arith.addf %84, %91 : vector<8x8xf32>
    %c9_i32 = arith.constant 9 : i32
    %93 = vector.broadcast %c9_i32 : i32 to vector<8x1xi32>
    %94 = arith.cmpi eq, %10, %93 : vector<8x1xi32>
    %95 = vector.extract_strided_slice %19 {offsets = [0, 72], sizes = [8, 8], strides = [1, 1]} : vector<8x96xf32> to vector<8x8xf32>
    %cst_18 = arith.constant 0.000000e+00 : f32
    %96 = vector.shape_cast %94 : vector<8x1xi1> to vector<8x1xi1>
    %97 = vector.broadcast %96 : vector<8x1xi1> to vector<8x8xi1>
    %98 = vector.broadcast %cst_18 : f32 to vector<8x8xf32>
    %99 = arith.select %97, %95, %98 : vector<8x8xi1>, vector<8x8xf32>
    %100 = arith.addf %92, %99 : vector<8x8xf32>
    %c10_i32 = arith.constant 10 : i32
    %101 = vector.broadcast %c10_i32 : i32 to vector<8x1xi32>
    %102 = arith.cmpi eq, %10, %101 : vector<8x1xi32>
    %103 = vector.extract_strided_slice %19 {offsets = [0, 80], sizes = [8, 8], strides = [1, 1]} : vector<8x96xf32> to vector<8x8xf32>
    %cst_19 = arith.constant 0.000000e+00 : f32
    %104 = vector.shape_cast %102 : vector<8x1xi1> to vector<8x1xi1>
    %105 = vector.broadcast %104 : vector<8x1xi1> to vector<8x8xi1>
    %106 = vector.broadcast %cst_19 : f32 to vector<8x8xf32>
    %107 = arith.select %105, %103, %106 : vector<8x8xi1>, vector<8x8xf32>
    %108 = arith.addf %100, %107 : vector<8x8xf32>
    %c11_i32 = arith.constant 11 : i32
    %109 = vector.broadcast %c11_i32 : i32 to vector<8x1xi32>
    %110 = arith.cmpi eq, %10, %109 : vector<8x1xi32>
    %111 = vector.extract_strided_slice %19 {offsets = [0, 88], sizes = [8, 8], strides = [1, 1]} : vector<8x96xf32> to vector<8x8xf32>
    %cst_20 = arith.constant 0.000000e+00 : f32
    %112 = vector.shape_cast %110 : vector<8x1xi1> to vector<8x1xi1>
    %113 = vector.broadcast %112 : vector<8x1xi1> to vector<8x8xi1>
    %114 = vector.broadcast %cst_20 : f32 to vector<8x8xf32>
    %115 = arith.select %113, %111, %114 : vector<8x8xi1>, vector<8x8xf32>
    %116 = arith.addf %108, %115 : vector<8x8xf32>
    %cst_21 = arith.constant 0.000000e+00 : f32
    %117 = vector.broadcast %cst_21 : f32 to vector<8x116xf32>
    %c0_22 = arith.constant 0 : index
    %c0_23 = arith.constant 0 : index
    %118 = vector.load %arg2[%c0_22, %c0_23] : memref<8x1xf32, #tpu.memory_space<vmem>>, vector<8x1xf32>
    %119 = tpu.concatenate %8, %116, %118, %117 in 1 : vector<8x3xf32>, vector<8x8xf32>, vector<8x1xf32>, vector<8x116xf32> -> vector<8x128xf32>
    %c0_24 = arith.constant 0 : index
    %c0_25 = arith.constant 0 : index
    %120 = vector.load %arg5[%c0_24, %c0_25] : memref<8x128xf32, #tpu.memory_space<vmem>>, vector<8x128xf32>
    tpu.vector_store %arg5[%c0_24, %c0_25], %119 {strides = array<i32>} : memref<8x128xf32, #tpu.memory_space<vmem>>, vector<8x128xf32>,
    return
  }
  func.func @transform_0(%arg0: i32) -> (i32, i32) {
    %c0_i32 = arith.constant 0 : i32
    %c0_i32_0 = arith.constant 0 : i32
    return %arg0, %c0_i32 : i32, i32
  }
  func.func @transform_1(%arg0: i32) -> (i32, i32) {
    %c0_i32 = arith.constant 0 : i32
    %c0_i32_0 = arith.constant 0 : i32
    return %arg0, %c0_i32 : i32, i32
  }
  func.func @transform_2(%arg0: i32) -> (i32, i32) {
    %c0_i32 = arith.constant 0 : i32
    %c0_i32_0 = arith.constant 0 : i32
    %c0_i32_1 = arith.constant 0 : i32
    return %c0_i32, %c0_i32_0 : i32, i32
  }
  func.func @transform_3(%arg0: i32) -> (i32, i32) {
    %c0_i32 = arith.constant 0 : i32
    %c0_i32_0 = arith.constant 0 : i32
    %c0_i32_1 = arith.constant 0 : i32
    return %c0_i32, %c0_i32_0 : i32, i32
  }
  func.func @transform_4(%arg0: i32) -> (i32, i32) {
    %c0_i32 = arith.constant 0 : i32
    %c0_i32_0 = arith.constant 0 : i32
    return %arg0, %c0_i32 : i32, i32
  }
}

</mosaic_0001>

<bundles_post_ra>
// kernel: tpu_custom_call.1
= control target key start
LH: loop header
LB: loop body
LE: loop exit
PB: predicated region body
PF: predicated region fallthrough
CT: control target
= control target key end

     0   :  { %v506_v3 = vmov 1   ;;  %v507_v6 = vmov 0.0|0.0   ;;  %vm508_vm0 = vmmov 0   ;;  %v509_v13 = vmov 0.0   ;;  %s659_s0 = inlined_call_operand.vmem [shape: s32[8,2], index: 0, kind: input, shape index: {}]   ;;  %s660_s1 = inlined_call_operand.vmem [shape: f32[8,1], index: 1, kind: input, shape index: {}]   ;;  %s661_s2 = inlined_call_operand.vmem [shape: f32[7,3], index: 2, kind: input, shape index: {}]   ;;  %s662_s3 = inlined_call_operand.vmem [shape: f32[128,96], index: 3, kind: input, shape index: {}]   ;;  %s663_s4 = inlined_call_operand.hbm [shape: f32[8,128], index: 4, kind: output, shape index: {}]  }
   0x1   :  { %v18_v0 = vld [vmem:[%s659_s0] sm:$0xff]  ;;  %v115_v2 = vld [vmem:[%s662_s3 + $0x8] sm:$0xff]  ;;  %478 = vset.pattern.permute.xlu0 %v506_v3  ;;  %434 = vmatprep.subr.bf16.mxu1 %v507_v6  ;;  %v116_v8 = vld [vmem:[%s662_s3 + $0x10] sm:$0xff]  ;;  %v510_v14 = vmov 0  }
   0x2   :  { %v114_v1 = vld [vmem:[%s662_s3] sm:$0xff]  ;;  %v107_v4 = vand.u32 127, %v18_v0  ;;  %v560_v5 = vshra.s32 %v18_v0, 7  ;;  %v117_v9 = vld [vmem:[%s662_s3 + $0x18] sm:$0xff]  ;;  %480 = vset.pattern.permute.xlu1 %v506_v3  ;;  %v119_v12 = vld [vmem:[%s662_s3 + $0x28] sm:$0xff]  ;;  %431 = vmatprep.mubr.msk.f32.mxu1 %vm508_vm0, %v509_v13 }
   0x3   :  { %v435_v7 = vpack.c.bf16 %v115_v2, %v114_v1  ;;  %v438_v10 = vpack.c.bf16 %v117_v9, %v116_v8  ;;  %v118_v11 = vld [vmem:[%s662_s3 + $0x20] sm:$0xff]  ;;  %394 = vmatprep.subr.mxu0 %v509_v13  ;;  %396 = vmatprep.mubr.msk.f32.mxu0 %vm508_vm0, %v509_v13 }
   0x4   :  { %109 = vperm.xlu0 %478, %v107_v4   ;;  %vm208_vm1 = vcmp.eq.s32.totalorder %v560_v5, 1  ;;  %vm220_vm2 = vcmp.eq.s32.totalorder %v560_v5, 2 }
   0x5   :  { %436 = vmatpush3.bf16.msra.mxu1 %v435_v7  ;;  %v209_v15 = vsel %vm208_vm1, 1, %v510_v14 }
   0x6   :  { %437 = vmatprep.subr.bf16.mxu1 %v507_v6 }
   0x7   :  { %9 = vsyncpa [#allocation3], 0  ;;  %211 = vperm.xlu1 %480, %v209_v15   ;;  %v441_v16 = vpack.c.bf16 %v119_v12, %v118_v11  ;;  %v221_v17 = vsel %vm220_vm2, 1, %v510_v14  ;;  %v120_v18 = vld [vmem:[%s662_s3 + $0x30] sm:$0xff]  ;;  %v121_v19 = vld [vmem:[%s662_s3 + $0x38] sm:$0xff]  ;;  %vm232_vm3 = vcmp.eq.s32.totalorder %v560_v5, 3  ;;  %v19_v43 = vlaneseq }
   0x8   :  { %479 = vset.pattern.permute.xlu0 %v510_v14  ;;  %vm244_vm4 = vcmp.eq.s32.totalorder %v560_v5, 4  ;;  %v444_v21 = vpack.c.bf16 %v121_v19, %v120_v18  ;;  %v233_v22 = vsel %vm232_vm3, 1, %v510_v14  ;;  %vm280_vm5 = vcmp.eq.s32.totalorder %v560_v5, 7  ;;  %v122_v23 = vld [vmem:[%s662_s3 + $0x40] sm:$0xff]  ;;  %v123_v24 = vld [vmem:[%s662_s3 + $0x48] sm:$0xff]  ;;  %v124_v28 = vld [vmem:[%s662_s3 + $0x50] sm:$0xff] }
   0x9   :  { %439 = vmatpush3.bf16.msra.mxu1 %v438_v10  ;;  %22 = vperm.xlu0 %479, %v18_v0   ;;  %v245_v20 = vsel %vm244_vm4, 1, %v510_v14  ;;  %vm256_vm6 = vcmp.eq.s32.totalorder %v560_v5, 5  ;;  %v281_v25 = vsel %vm280_vm5, 1, %v510_v14  ;;  %v447_v26 = vpack.c.bf16 %v123_v24, %v122_v23  ;;  %v125_v29 = vld [vmem:[%s662_s3 + $0x58] sm:$0xff]  ;;  %v126_v33 = vld [vmem:[%s662_s3 + $0x60] sm:$0xff]  ;;  %v127_v34 = vld [vmem:[%s662_s3 + $0x68] sm:$0xff] }
   0xa   :  { %440 = vmatprep.subr.bf16.mxu1 %v507_v6  ;;  %v257_v27 = vsel %vm256_vm6, 1, %v510_v14  ;;  %vm304_vm7 = vcmp.eq.s32.totalorder %v560_v5, 9  ;;  %vm268_vm8 = vcmp.eq.s32.totalorder %v560_v5, 6  ;;  %v450_v31 = vpack.c.bf16 %v125_v29, %v124_v28  ;;  %v128_v38 = vld [vmem:[%s662_s3 + $0x70] sm:$0xff]  ;;  %v129_v39 = vld [vmem:[%s662_s3 + $0x78] sm:$0xff]  ;;  %s512_s0 = smov 120  }
   0xb   :  { %223 = vperm.xlu1 %480, %v221_v17   ;;  %v305_v30 = vsel %vm304_vm7, 1, %v510_v14  ;;  %v269_v32 = vsel %vm268_vm8, 1, %v510_v14  ;;  %vm328_vm9 = vcmp.eq.s32.totalorder %v560_v5, 11  ;;  %vm292_vm10 = vcmp.eq.s32.totalorder %v560_v5, 8  ;;  %v27_v49 = vld [vmem:[%s661_s2] sm:$0x7f] }
   0xc   :  { %v329_v35 = vsel %vm328_vm9, 1, %v510_v14  ;;  %v453_v36 = vpack.c.bf16 %v127_v34, %v126_v33  ;;  %v293_v37 = vsel %vm292_vm10, 1, %v510_v14  ;;  %vm316_vm11 = vcmp.eq.s32.totalorder %v560_v5, 10  ;;  %s513_s23 = smov 112   ;;  %s514_s2 = smov 104   ;;  %v340_v10 = vld [vmem:[%s660_s1] sm:$0xff] }
   0xd   :  { %442 = vmatpush3.bf16.msra.mxu1 %v441_v16  ;;  %481 = vset.pattern.permute.xlu0 %v506_v3  ;;  %v456_v40 = vpack.c.bf16 %v129_v39, %v128_v38  ;;  %v317_v41 = vsel %vm316_vm11, 1, %v510_v14  ;;  %vm200_vm12 = vcmp.eq.s32.totalorder %v560_v5, 0  ;;  %v20_v44 = vand.u32 127, %v19_v43  ;;  %s515_s24 = smov 96   ;;  %s516_s25 = smov 88  }
   0xe   :  { %443 = vmatprep.subr.bf16.mxu1 %v507_v6  ;;  %247 = vperm.xlu0 %481, %v245_v20   ;;  %v201_v42 = vsel %vm200_vm12, 1, %v510_v14  ;;  %v511_v46 = vmov 1.0   ;;  %vm32_vm15 = vcmask 1046528   ;;  %vm28_vm0 = vcmask 56320   ;;  %s517_s26 = smov 80   ;;  %s518_s27 = smov 72  }
   0xf   :  { %235 = vperm.xlu1 %480, %v233_v22   ;;  %395 = vmatpush3.msk.msra.mxu0 %vm32_vm15, %v27_v49  ;;  %s519_s28 = smov 64   ;;  %s520_s29 = smov 56   ;;  %vm353_vm15 = vcmask 97280  }
  0x10   :  { %s521_s30 = smov 48   ;;  %s522_s5 = smov 40  }
  0x11   :  { %445 = vmatpush3.bf16.msra.mxu1 %v444_v21  ;;  %s523_s8 = smov 11   ;;  %s524_s1 = smov 3  }
  0x12   :  { %446 = vmatprep.subr.bf16.mxu1 %v507_v6  ;;  %283 = vperm.xlu0 %481, %v281_v25   ;;  %s525_s9 = smov [#allocation2]  }
  0x13   :  { %259 = vperm.xlu1 %480, %v257_v27   ;;  %s362_s10 = sshll.u32 %s525_s9, 4  ;;  %s363_s10 = int_to_ptr.vmem [resolvable:$true] %s362_s10 }
  0x14   :  { %s482_s11 = scalar_lea.vmem %s363_s10, 128  ;;  %p487_p1 = scmp.lt.s32.totalorder %s363_s10, %s363_s10 }
  0x15   :  { %448 = vmatpush3.bf16.msra.mxu1 %v447_v26  ;;  %p483_p0 = scmp.ne.s32.totalorder %s363_s10, %s482_s11  ;;  %p488_p2 = scmp.lt.s32.totalorder %s482_s11, %s482_s11 }
  0x16   :  { %449 = vmatprep.subr.bf16.mxu1 %v507_v6  ;;  %307 = vperm.xlu0 %481, %v305_v30  }
  0x17   :  { %271 = vperm.xlu1 %480, %v269_v32   ;;  %p489_p3 = por %p488_p2, %p487_p1 }
  0x19   :  { %451 = vmatpush3.bf16.msra.mxu1 %v450_v31  ;;  %p490_p4 = pnand %p489_p3, %p483_p0 }
  0x1a   :  { %452 = vmatprep.subr.bf16.mxu1 %v507_v6  ;;  %331 = vperm.xlu0 %481, %v329_v35  }
  0x1b   :  { %295 = vperm.xlu1 %480, %v293_v37  }
  0x1d   :  { %454 = vmatpush3.bf16.msra.mxu1 %v453_v36 }
  0x1e   :  { %455 = vmatprep.subr.bf16.mxu1 %v507_v6 }
  0x1f   :  { %319 = vperm.xlu1 %480, %v317_v41  }
  0x21   :  { %457 = vmatpush3.bf16.msra.mxu1 %v456_v40 }
  0x23   :  { %203 = vperm.xlu1 %480, %v201_v42  }
  0x83   :  { %v110_v45 = vpop.permute.xlu0 %109 }
  0x84   :  { %vm111_vm13 = vcmp.eq.s32.totalorder %v20_v44, %v110_v45 }
  0x85   :  { %432 = vmatmul.mubr.msk.f32.vlgmr.msra.gmra.mrb[0].mxu1 %vm111_vm13, %v511_v46  ;;  %vm349_vm13 = vcmask 23552  }
  0x86   :  { %v212_v50 = vpop.permute.xlu1 %211 }
  0x87   :  { %vm213_vm1 = vcmp.eq.s32.totalorder %v212_v50, 1 }
  0x88   :  { %v23_v47 = vpop.permute.xlu0 %22 }
  0x89   :  { %vm24_vm14 = vcmp.eq.s32.totalorder %v20_v44, %v23_v47 }
  0x8a   :  { %v370_v48 = vsel %vm24_vm14, 1.0, %v509_v13  ;;  %v224_v51 = vpop.permute.xlu1 %223  ;;  %vm351_vm14 = vcmask 89088  }
  0x8b   :  { %397 = vmatmul.mubr.msk.f32.vlgmr.msra.gmra.mrb[0].mxu0 %vm28_vm0, %v370_v48  ;;  %vm225_vm2 = vcmp.eq.s32.totalorder %v224_v51, 1 }
  0x8d   :  { %v248_v54 = vpop.permute.xlu0 %247 }
  0x8e   :  { %v236_v52 = vpop.permute.xlu1 %235  ;;  %vm249_vm3 = vcmp.eq.s32.totalorder %v248_v54, 1 }
  0x8f   :  { %vm237_vm4 = vcmp.eq.s32.totalorder %v236_v52, 1 }
  0x91   :  { %v284_v60 = vpop.permute.xlu0 %283 }
  0x92   :  { %v260_v53 = vpop.permute.xlu1 %259  ;;  %vm285_vm7 = vcmp.eq.s32.totalorder %v284_v60, 1 }
  0x93   :  { %vm261_vm5 = vcmp.eq.s32.totalorder %v260_v53, 1 }
  0x95   :  { %v308_v0 = vpop.permute.xlu0 %307 }
  0x96   :  { %v272_v59 = vpop.permute.xlu1 %271  ;;  %vm309_vm9 = vcmp.eq.s32.totalorder %v308_v0, 1 }
  0x97   :  { %vm273_vm6 = vcmp.eq.s32.totalorder %v272_v59, 1 }
  0x99   :  { %v332_v6 = vpop.permute.xlu0 %331 }
  0x9a   :  { %v296_v63 = vpop.permute.xlu1 %295  ;;  %vm333_vm11 = vcmp.eq.s32.totalorder %v332_v6, 1 }
  0x9b   :  { %vm297_vm8 = vcmp.eq.s32.totalorder %v296_v63, 1 }
  0x9e   :  { %v320_v5 = vpop.permute.xlu1 %319 }
  0x9f   :  { %vm321_vm10 = vcmp.eq.s32.totalorder %v320_v5, 1 }
  0xa2   :  { %v204_v13 = vpop.permute.xlu1 %203 }
  0xa3   :  { %vm205_vm12 = vcmp.eq.s32.totalorder %v204_v13, 1 }
 0x158   :  { %v196_v55 = vpop.f32.mrb[0].mxu1 }
 0x159   :  { %v433_v56 = vpop.f32.mrb[1].mxu1  ;;  %v214_v57 = vsel %vm213_vm1, %v196_v55, 0.0  ;;  %v226_v58 = vsel %vm225_vm2, %v196_v55, 0.0  ;;  %v238_v61 = vsel %vm237_vm4, %v196_v55, 0.0  ;;  %v250_v62 = vsel %vm249_vm3, %v196_v55, 0.0 }
 0x15a   :  { %216 = vrot.lane.b32.xlu0 %v214_v57, %s512_s0  ;;  %228 = vrot.lane.b32.xlu1 %v226_v58, %s513_s23  ;;  %v262_v1 = vsel %vm261_vm5, %v196_v55, 0.0  ;;  %v274_v2 = vsel %vm273_vm6, %v196_v55, 0.0  ;;  %v286_v3 = vsel %vm285_vm7, %v196_v55, 0.0  ;;  %v298_v4 = vsel %vm297_vm8, %v196_v55, 0.0 }
 0x15b   :  { %v310_v7 = vsel %vm309_vm9, %v196_v55, 0.0  ;;  %v322_v8 = vsel %vm321_vm10, %v196_v55, 0.0  ;;  %v334_v9 = vsel %vm333_vm11, %v196_v55, 0.0  ;;  %v206_v15 = vsel %vm205_vm12, %v196_v55, 0.0 }
 0x15e   :  { %240 = vrot.lane.b32.xlu0 %v238_v61, %s514_s2  ;;  %252 = vrot.lane.b32.xlu1 %v250_v62, %s515_s24  ;;  %v102_v11 = vpop.f32.mrb[0].mxu0 }
 0x15f   :  { %v398_v12 = vpop.f32.mrb[1].mxu0 }
 0x162   :  { %264 = vrot.lane.b32.xlu0 %v262_v1, %s516_s25  ;;  %276 = vrot.lane.b32.xlu1 %v274_v2, %s517_s26 }
 0x166   :  { %288 = vrot.lane.b32.xlu0 %v286_v3, %s518_s27  ;;  %300 = vrot.lane.b32.xlu1 %v298_v4, %s519_s28 }
 0x16a   :  { %312 = vrot.lane.b32.xlu0 %v310_v7, %s520_s29  ;;  %324 = vrot.lane.b32.xlu1 %v322_v8, %s521_s30 }
 0x16e   :  { %336 = vrot.lane.b32.xlu0 %v334_v9, %s522_s5 }
 0x172   :  { %346 = vrot.lane.b32.xlu0 %v340_v10, %s523_s8 }
 0x1cc   :  { %v217_v14 = vpop.permute.xlu0 %216  ;;  %v229_v16 = vpop.permute.xlu1 %228 }
 0x1cd   :  { %v219_v17 = vadd.f32 %v217_v14, %v206_v15 }
 0x1cf   :  { %v231_v18 = vadd.f32 %v229_v16, %v219_v17 }
 0x1d0   :  { %v241_v19 = vpop.permute.xlu0 %240  ;;  %v253_v20 = vpop.permute.xlu1 %252 }
 0x1d1   :  { %v243_v21 = vadd.f32 %v241_v19, %v231_v18 }
 0x1d3   :  { %v255_v22 = vadd.f32 %v253_v20, %v243_v21 }
 0x1d4   :  { %v265_v23 = vpop.permute.xlu0 %264  ;;  %v277_v24 = vpop.permute.xlu1 %276 }
 0x1d5   :  { %v267_v25 = vadd.f32 %v265_v23, %v255_v22 }
 0x1d7   :  { %v279_v26 = vadd.f32 %v277_v24, %v267_v25 }
 0x1d8   :  { %v289_v27 = vpop.permute.xlu0 %288  ;;  %v301_v28 = vpop.permute.xlu1 %300 }
 0x1d9   :  { %v291_v29 = vadd.f32 %v289_v27, %v279_v26 }
 0x1db   :  { %v303_v30 = vadd.f32 %v301_v28, %v291_v29 }
 0x1dc   :  { %v313_v31 = vpop.permute.xlu0 %312  ;;  %v325_v33 = vpop.permute.xlu1 %324 }
 0x1dd   :  { %v315_v32 = vadd.f32 %v313_v31, %v303_v30 }
 0x1df   :  { %v327_v34 = vadd.f32 %v325_v33, %v315_v32 }
 0x1e0   :  { %v337_v35 = vpop.permute.xlu0 %336 }
 0x1e1   :  { %v339_v36 = vadd.f32 %v337_v35, %v327_v34 }
 0x1e3   :  { %342 = vrot.lane.b32.xlu1 %v339_v36, %s524_s1 }
 0x1e4   :  { %v347_v37 = vpop.permute.xlu0 %346 }
 0x255   :  { %v343_v38 = vpop.permute.xlu1 %342 }
 0x256   :  { %v350_v39 = vsel %vm349_vm13, %v102_v11, %v343_v38 }
 0x257   :  { %v352_v40 = vsel %vm351_vm14, %v350_v39, %v347_v37 }
 0x258   :  { %v354_v41 = vsel %vm353_vm15, %v352_v40, 0.0 }
 0x259   :  { %355 = vst [vmem:[#allocation2] sm:$0xff] %v354_v41 }
 0x25a   :  { %493 = shalt.err (!%p490_p4)
}
 0x25b   :  { %s494_s14 = scalar_lea.hbm %s663_s4, 128 }
 0x25c   :  { %p495_p5 = scmp.ne.s32.totalorder %s663_s4, %s494_s14  ;;  %p498_p6 = scmp.lt.u32.totalorder %s494_s14, %s663_s4 }
 0x25e   :  { %p500_p7 = pnand %p498_p6, %p495_p5 }
 0x260   :  { %503 = shalt.err (!%p500_p7)
}
 0x261   :  { %365 = dma.vmem_to_hbm [thread:$0]  %s363_s10, 128, %s663_s4, [#allocation3]  }
 0x262   :  { %504 = dma.done.wait [#allocation3], 128  }
 0x263   :  { %505 = vsyncadd [#allocation3], 4294967168 }
 0x264   :  { %369 = vsyncpa [#allocation3], 1 }

</bundles_post_ra>
